<compile_context>
chip_gen: v6e
topology: v6e:2x2x1
jax: 0.10.0
libtpu: 0.0.40
codegen_flags: <defaults>
</compile_context>

<pallas_src>
import math

import numpy as np
import jax
import jax.numpy as jnp
from jax.experimental import pallas as pl
from jax.experimental.pallas import tpu as pltpu

_LANE = 128      # lane granularity (last dim)
_SUBLANE = 8     # sublane granularity (second-to-last dim)
_MIB = 1024 * 1024


def _round_up(v: int, m: int) -> int:
    return ((v + m - 1) // m) * m


def _interp_matrix(in_size: int, out_size: int) -> np.ndarray:
    """Row-stochastic bilinear interpolation matrix (align_corners=False),
    matching PyTorch's area_pixel_compute_source_index semantics."""
    i = np.arange(out_size, dtype=np.float64)
    scale = in_size / out_size
    src = (i + 0.5) * scale - 0.5
    src = np.maximum(src, 0.0)                      # PyTorch clamps negative coords
    x0 = np.floor(src).astype(np.int64)
    x0 = np.clip(x0, 0, in_size - 1)
    x1 = np.minimum(x0 + 1, in_size - 1)
    lam = (src - x0).astype(np.float64)
    w = np.zeros((out_size, in_size), dtype=np.float64)
    rows = np.arange(out_size)
    np.add.at(w, (rows, x0), 1.0 - lam)
    np.add.at(w, (rows, x1), lam)
    return w.astype(np.float32)


def _make_kernel(tb: int, row_first: bool):
    """Kernel over one block of TB (c,t) planes.

    x_ref  : (tb, h, w)
    wh_ref : (nh_pad, h)        row-interp matrix (zero-padded rows)
    wwt_ref: (w, nw_pad)        pre-transposed col-interp matrix (zero-padded cols)
    o_ref  : (tb, nh_pad, nw_pad)

    Per-plane 2-D matmuls: the single Wh / Ww^T VMEM tiles are reused across
    the whole batch (no broadcast materialization), temporaries stay one plane.
    """
    if row_first:
        def kernel(x_ref, wh_ref, wwt_ref, o_ref):
            @pl.loop(0, tb)
            def _(bi):
                t1 = jnp.dot(wh_ref[...], x_ref[bi],
                             preferred_element_type=jnp.float32)       # (nh_pad, w)
                o_ref[bi] = jnp.dot(t1, wwt_ref[...],
                                    preferred_element_type=jnp.float32
                                    ).astype(o_ref.dtype)              # (nh_pad, nw_pad)
    else:
        def kernel(x_ref, wh_ref, wwt_ref, o_ref):
            @pl.loop(0, tb)
            def _(bi):
                t1 = jnp.dot(x_ref[bi], wwt_ref[...],
                             preferred_element_type=jnp.float32)       # (h, nw_pad)
                o_ref[bi] = jnp.dot(wh_ref[...], t1,
                                    preferred_element_type=jnp.float32
                                    ).astype(o_ref.dtype)              # (nh_pad, nw_pad)
    return kernel


def _choose_tb(b: int, cap: int) -> int:
    """Largest divisor of b that is <= cap, preferring an even step count
    (b // tb) so v7x's two TensorCores get balanced work."""
    cap = max(1, min(cap, b))
    divs = set()
    i = 1
    while i * i <= b:
        if b % i == 0:
            divs.add(i)
            divs.add(b // i)
        i += 1
    cands = sorted(d for d in divs if d <= cap)
    best = cands[-1]
    even = [d for d in cands if (b // d) % 2 == 0 and 2 * d >= best]
    return max(even) if even else best


def long_side_scale(x: jax.Array, size: int) -> jax.Array:
    """Pallas implementation of LongSideScale.forward (bilinear, align_corners=False)."""
    assert x.ndim == 4, "expected (C, T, H, W)"
    assert x.dtype == jnp.float32
    c, t, h, w = x.shape
    if w < h:
        new_w = int(math.floor(float(w) / h * size))
        new_h = size
    else:
        new_w = size
        new_h = int(math.floor(float(h) / w * size))

    # Lane/sublane-dense padded output extents (zero-padded interp matrices).
    nh_pad = _round_up(new_h, _SUBLANE)
    nw_pad = _round_up(new_w, _LANE)

    wh = np.zeros((nh_pad, h), dtype=np.float32)
    wh[:new_h, :] = _interp_matrix(h, new_h)                  # (nh_pad, H)
    wwt = np.zeros((w, nw_pad), dtype=np.float32)
    wwt[:, :new_w] = _interp_matrix(w, new_w).T               # (W, nw_pad), pre-transposed

    h8 = _round_up(h, _SUBLANE)
    w128 = _round_up(w, _LANE)

    # Choose the cheaper matmul order from MXU-tile-rounded per-plane FLOPs.
    def mm_cost(m, k, n):
        return _round_up(m, _SUBLANE) * _round_up(k, _LANE) * _round_up(n, _LANE)

    cost_row_first = mm_cost(nh_pad, h, w) + mm_cost(nh_pad, w, nw_pad)
    cost_col_first = mm_cost(h, w, nw_pad) + mm_cost(nh_pad, h, nw_pad)
    row_first = cost_row_first <= cost_col_first

    b = c * t
    x_flat = x.reshape(b, h, w)

    # ---- Per-generation VMEM budgeting -------------------------------------
    try:
        vmem_cap = int(pltpu.get_tpu_info().vmem_capacity_bytes)
    except Exception:
        vmem_cap = 64 * _MIB                      # v7x per-core value (most conservative)
    vmem_limit = max(32 * _MIB, min(vmem_cap - 16 * _MIB, 100 * _MIB))

    # Bytes actually resident: double-buffered x/out blocks (per-plane * TB),
    # both interp matrices (count 2x conservatively), per-plane temporaries.
    per_plane = 4 * (h * w + nh_pad * nw_pad)
    const_bytes = 2 * 4 * (nh_pad * h + w * nw_pad)
    temp_bytes = 4 * (h8 * w128 + nh_pad * w128 + h8 * nw_pad
                      + nh_pad * nw_pad + nh_pad * h8 + w128 * nw_pad)
    margin = 2 * _MIB

    needed_min = 2 * per_plane + const_bytes + temp_bytes + margin
    if needed_min > vmem_limit:                   # very large planes: open the limit up
        vmem_limit = min(needed_min, max(vmem_cap - 4 * _MIB, vmem_limit))

    avail = vmem_limit - const_bytes - temp_bytes - margin
    tb_vmem = max(1, avail // (2 * per_plane))

    # ---- Grid sizing: target >= 8 steps (>= 4 per TC on v7x), no host pad ---
    target_steps = min(b, 8)
    tb_steps = max(1, b // target_steps)
    tb = _choose_tb(b, min(int(tb_vmem), tb_steps))
    num_blocks = b // tb                           # exact: tb divides b

    # ---- Cost estimate for XLA scheduling ----------------------------------
    if row_first:
        flops_pp = 2 * (nh_pad * h * w + nh_pad * w * nw_pad)
    else:
        flops_pp = 2 * (h * w * nw_pad + nh_pad * h * nw_pad)
    bytes_accessed = 4 * (b * h * w + b * nh_pad * nw_pad + nh_pad * h + w * nw_pad)
    cost = pl.CostEstimate(flops=b * flops_pp, transcendentals=0,
                           bytes_accessed=bytes_accessed)

    kernel = _make_kernel(tb, row_first)

    out_padded = pl.pallas_call(
        kernel,
        out_shape=jax.ShapeDtypeStruct((b, nh_pad, nw_pad), jnp.float32),
        grid_spec=pltpu.PrefetchScalarGridSpec(
            num_scalar_prefetch=0,
            grid=(num_blocks,),
            in_specs=[
                pl.BlockSpec((tb, h, w), lambda i: (i, 0, 0)),
                # Constant index_map -> interp matrices are fetched once, not
                # re-DMA'd each grid step.
                pl.BlockSpec((nh_pad, h), lambda i: (0, 0)),
                pl.BlockSpec((w, nw_pad), lambda i: (0, 0)),
            ],
            out_specs=pl.BlockSpec((tb, nh_pad, nw_pad), lambda i: (i, 0, 0)),
        ),
        compiler_params=pltpu.CompilerParams(
            dimension_semantics=("parallel",),
            vmem_limit_bytes=int(vmem_limit),
        ),
        cost_estimate=cost,
    )(x_flat, jnp.asarray(wh), jnp.asarray(wwt))

    if nh_pad == new_h and nw_pad == new_w:
        out = out_padded
    else:
        out = out_padded[:, :new_h, :new_w]
    return out.reshape(c, t, new_h, new_w)


def _reference(x: np.ndarray, size: int) -> np.ndarray:
    """Pure-numpy reference of the same separable bilinear resize."""
    c, t, h, w = x.shape
    if w < h:
        new_w = int(math.floor(float(w) / h * size))
        new_h = size
    else:
        new_w = size
        new_h = int(math.floor(float(h) / w * size))
    wh = _interp_matrix(h, new_h)
    ww = _interp_matrix(w, new_w)
    return np.einsum("ph,cthw,qw->ctpq", wh, x, ww).astype(np.float32)


if __name__ == "__main__":
    key = jax.random.PRNGKey(0)

    cases = [
        # (C, T, H, W, size)
        (3, 4, 16, 12, 8),   # w < h  (long side H)   -> new_h=8,  new_w=6   (row-first path)
        (2, 3, 12, 16, 8),   # w >= h (long side W)   -> new_h=6,  new_w=8   (row-first path)
        (2, 2, 8, 8, 32),    # upscale                -> new_h=32, new_w=32  (col-first path)
    ]

    for idx, (C, T, H, W, SIZE) in enumerate(cases):
        key, sub = jax.random.split(key)
        x = jax.random.normal(sub, (C, T, H, W), dtype=jnp.float32)

        out = long_side_scale(x, SIZE)
        out = jax.block_until_ready(out)

        ref = _reference(np.asarray(x), SIZE)
        assert out.shape == ref.shape, (idx, out.shape, ref.shape)
        np.testing.assert_allclose(np.asarray(out), ref, rtol=1e-5, atol=1e-5)

    print("KERNEL_OK")
</pallas_src>

<mosaic_0001>
module attributes {stable_mosaic.version = 11 : i64} {
  func.func @kernel(%arg0: i32, %arg1: memref<1x16x12xf32, #tpu.memory_space<vmem>>, %arg2: memref<8x16xf32, #tpu.memory_space<vmem>>, %arg3: memref<12x128xf32, #tpu.memory_space<vmem>>, %arg4: memref<1x8x128xf32, #tpu.memory_space<vmem>>) attributes {dimension_semantics = [#tpu.dimension_semantics<parallel>], iteration_bounds = array<i64: 12>, scalar_prefetch = 0 : i64, scratch_operands = 0 : i64, tpu.core_type = #tpu.core_type<tc>, window_params = [{transform_indices = @transform_0, window_bounds = array<i64: 1, 16, 12>}, {pipeline_mode = #tpu.pipeline_mode<synchronous>, transform_indices = @transform_1, window_bounds = array<i64: 8, 16>}, {pipeline_mode = #tpu.pipeline_mode<synchronous>, transform_indices = @transform_2, window_bounds = array<i64: 12, 128>}, {transform_indices = @transform_3, window_bounds = array<i64: 1, 8, 128>}]} {
    %c0_i32 = arith.constant 0 : i32
    %c1_i32 = arith.constant 1 : i32
    %0 = arith.muli %c0_i32, %c1_i32 : i32
    %c0_i32_0 = arith.constant 0 : i32
    %1 = arith.addi %c0_i32_0, %0 : i32
    %c0 = arith.constant 0 : index
    %c0_1 = arith.constant 0 : index
    %2 = vector.load %arg2[%c0, %c0_1] : memref<8x16xf32, #tpu.memory_space<vmem>>, vector<8x16xf32>
    %3 = arith.index_cast %1 : i32 to index
    %c0_2 = arith.constant 0 : index
    %c0_3 = arith.constant 0 : index
    %4 = vector.load %arg1[%3, %c0_2, %c0_3] : memref<1x16x12xf32, #tpu.memory_space<vmem>>, vector<1x16x12xf32>
    %5 = vector.shape_cast %4 : vector<1x16x12xf32> to vector<16x12xf32>
    %cst = arith.constant dense<0.000000e+00> : vector<8x12xf32>
    %6 = tpu.matmul %2, %5, %cst {dimension_numbers = #tpu.dot_dimension_numbers<[1], [0], [0], [1], [0, 0, 1, 1], [], []>} : vector<8x16xf32>, vector<16x12xf32>, vector<8x12xf32> -> vector<8x12xf32>
    %c0_4 = arith.constant 0 : index
    %c0_5 = arith.constant 0 : index
    %7 = vector.load %arg3[%c0_4, %c0_5] : memref<12x128xf32, #tpu.memory_space<vmem>>, vector<12x128xf32>
    %cst_6 = arith.constant dense<0.000000e+00> : vector<8x128xf32>
    %8 = tpu.matmul %6, %7, %cst_6 {dimension_numbers = #tpu.dot_dimension_numbers<[1], [0], [0], [1], [0, 0, 1, 1], [], []>} : vector<8x12xf32>, vector<12x128xf32>, vector<8x128xf32> -> vector<8x128xf32>
    %9 = arith.index_cast %1 : i32 to index
    %c0_7 = arith.constant 0 : index
    %c0_8 = arith.constant 0 : index
    %10 = vector.load %arg4[%9, %c0_7, %c0_8] : memref<1x8x128xf32, #tpu.memory_space<vmem>>, vector<1x8x128xf32>
    %11 = vector.shape_cast %10 : vector<1x8x128xf32> to vector<8x128xf32>
    %12 = vector.shape_cast %8 : vector<8x128xf32> to vector<1x8x128xf32>
    tpu.vector_store %arg4[%9, %c0_7, %c0_8], %12 {strides = array<i32>} : memref<1x8x128xf32, #tpu.memory_space<vmem>>, vector<1x8x128xf32>,
    %c1_i32_9 = arith.constant 1 : i32
    return
  }
  func.func @transform_0(%arg0: i32) -> (i32, i32, i32) {
    %c0_i32 = arith.constant 0 : i32
    %c0_i32_0 = arith.constant 0 : i32
    %c0_i32_1 = arith.constant 0 : i32
    return %arg0, %c0_i32, %c0_i32_0 : i32, i32, i32
  }
  func.func @transform_1(%arg0: i32) -> (i32, i32) {
    %c0_i32 = arith.constant 0 : i32
    %c0_i32_0 = arith.constant 0 : i32
    %c0_i32_1 = arith.constant 0 : i32
    return %c0_i32, %c0_i32_0 : i32, i32
  }
  func.func @transform_2(%arg0: i32) -> (i32, i32) {
    %c0_i32 = arith.constant 0 : i32
    %c0_i32_0 = arith.constant 0 : i32
    %c0_i32_1 = arith.constant 0 : i32
    return %c0_i32, %c0_i32_0 : i32, i32
  }
  func.func @transform_3(%arg0: i32) -> (i32, i32, i32) {
    %c0_i32 = arith.constant 0 : i32
    %c0_i32_0 = arith.constant 0 : i32
    %c0_i32_1 = arith.constant 0 : i32
    return %arg0, %c0_i32, %c0_i32_0 : i32, i32, i32
  }
}

</mosaic_0001>

<bundles_post_ra>
// kernel: tpu_custom_call.1
= control target key start
LH: loop header
LB: loop body
LE: loop exit
PB: predicated region body
PF: predicated region fallthrough
CT: control target
= control target key end

     0   :  { %8 = vsyncpa [#allocation3], 0  ;;  %s962_s0 = inlined_call_operand.hbm [shape: f32[12,16,12], index: 0, kind: input, shape index: {}]   ;;  %s963_s1 = inlined_call_operand.hbm [shape: f32[8,16], index: 1, kind: input, shape index: {}]   ;;  %s964_s2 = inlined_call_operand.hbm [shape: f32[12,128], index: 2, kind: input, shape index: {}]   ;;  %s965_s3 = inlined_call_operand.hbm [shape: f32[12,8,128], index: 3, kind: output, shape index: {}]  }
   0x1   :  { %10 = vsyncpa [#allocation3 + $0x1], 0 }
   0x2   :  { %11 = vsyncpa [#allocation6], 0 }
   0x3   :  { %12 = vsyncpa [#allocation4], 0 }
   0x4   :  { %14 = vsyncpa [#allocation4 + $0x1], 0  ;;  %s767_s12 = smov 0   ;;  %s769_s13 = smov 0  }
   0x5   :  { %s771_s14 = smov 0   ;;  %s773_s15 = smov 0  }
   0x6 LB: > { %s788_s16 = sadd.s32 4294967295, %s737_s15   ;;  %s477_s17 = sadd.s32 4294967294, %s737_s15   ;;  %s737_s15 = sphi %s773_s15, %s986_s15   ;;  %s733_s14 = sphi %s771_s14, %s985_s14   ;;  %s729_s13 = sphi %s769_s13, %s984_s13   ;;  %s725_s12 = sphi %s767_s12, %s983_s12  }
   0x7   : > { %s792_s18 = sadd.s32 1, %s737_s15   ;;  %s27_s19 = sadd.s32 1, %s733_s14 }
   0x8   : > { %s24_s20 = ssub.s32 %s737_s15, %s792_s18  ;;  %p34_p0 = scmp.ne.s32.totalorder %s733_s14, %s729_s13 }
   0x9   : > { %p25_p1 = scmp.eq.s32.totalorder %s24_s20, 0  ;;  %p35_p2 = scmp.eq.s32.totalorder %s737_s15, 0 }
   0xa   : > { %p40_p3 = scmp.ne.s32.totalorder %s729_s13, %s725_s12  ;;  %p966_p4 = scmp.eq.s32.totalorder %s788_s16, 0 }
   0xb   : > { %s804_s21 = scalar_select %p25_p1, %s733_s14, %s27_s19  }
   0xc   : > { %p806_p5 = por %p35_p2, %p34_p0  ;;  %p812_p6 = por %p966_p4, %p40_p3 }
   0xd   : > { %p106_p7 = scmp.eq.s32.totalorder %s788_s16, 11  ;;  %p112_p8 = scmp.eq.s32.totalorder %s477_s17, 11 }
   0xe   : > { %s971_s23 = scalar_select %p812_p6, 1, 0 }
   0xf   : > { %p478_p9 = scmp.ge.s32.totalorder %s737_s15, 1  ;;  %p119_p10 = scmp.lt.s32.totalorder %s737_s15, 13 }
  0x10   : > { %p819_p11 = por %p106_p7, %p34_p0  ;;  %p823_p12 = por %p112_p8, %p40_p3 }
  0x11   : > { %p827_p13 = pnand %p478_p9, %p119_p10  ;;  %s739_s27 = smov [#allocation5]  }
  0x12   : > { %s972_s24 = scalar_select %p819_p11, 1, 0 }
  0x13   : > { %s973_s25 = scalar_select %p823_p12, 1, 0 }
  0x14   : > { %s974_s26 = scalar_select %p827_p13, 1, 0 }
  0x15   : > { %p530_p1 = pneg %p827_p13  ;;  %s132_s28 = sshll.u32 %s739_s27, 4  ;;  %s133_s28 = int_to_ptr.vmem [resolvable:$true] %s132_s28 }
  0x16   : > { %p547_p2 = scmp.lt.s32.totalorder %s737_s15, 12  ;;  %s740_s4 = smov [#allocation7]  }
  0x17   : > { %p836_p0 = pnand %p530_p1, %p966_p4  ;;  %s142_s5 = sshll.u32 %s740_s4, 4  ;;  %s143_s5 = int_to_ptr.vmem [resolvable:$true] %s142_s5 }
  0x18   : > { %p842_p3 = pnand %p547_p2, %p806_p5  ;;  %s600_s6 = scalar_lea.vmem %s133_s28, 128 }
  0x19   : > { %p591_p7 = pneg %p836_p0  ;;  %p601_p8 = scmp.ne.s32.totalorder %s133_s28, %s600_s6 }
  0x1a   : > { %p608_p1 = scmp.lt.s32.totalorder %s133_s28, %s133_s28  ;;  %p609_p4 = scmp.lt.s32.totalorder %s600_s6, %s600_s6 }
  0x1b   : > { %p603_p9 = pnand %p601_p8, %p591_p7 }
  0x1c   : > { %p610_p12 = por %p609_p4, %p608_p1 }
  0x1d   : > { %p604_p10 = pneg %p603_p9 }
  0x1f   : > { %p611_p11 = pnand %p610_p12, %p604_p10 }
  0x21   : > { %614 = shalt.err (!%p611_p11)
}
  0x22   : > { %533 = dma.hbm_to_vmem [thread:$0]  (!%p836_p0), %s963_s1, 128, %s133_s28, [#allocation6]  }
  0x23   : > { %s156_s9 = sand.u32 1, %s733_s14   ;;  %s626_s10 = scalar_lea.vmem %s143_s5, 256 }
  0x24   : > { %p627_p5 = scmp.ne.s32.totalorder %s143_s5, %s626_s10  ;;  %p634_p9 = scmp.lt.s32.totalorder %s143_s5, %s143_s5 }
  0x25   : > { %p635_p6 = scmp.lt.s32.totalorder %s626_s10, %s626_s10 }
  0x26   : > { %p629_p2 = pnand %p627_p5, %p591_p7 }
  0x27   : > { %p636_p4 = por %p635_p6, %p634_p9 }
  0x28   : > { %p630_p8 = pneg %p629_p2 }
  0x2a   : > { %p637_p12 = pnand %p636_p4, %p630_p8 }
  0x2c   : > { %640 = shalt.err (!%p637_p12)
}
  0x2d   : > { %s741_s11 = smov 128   ;;  %s742_s17 = smov 8  }
  0x2e   : > { %536 = dma.hbm_to_vmem [thread:$0]  (!%p836_p0), %s964_s2, 256, %s143_s5, [#allocation6], %s741_s11, %s741_s11, %s742_s17  }
  0x2f   : > { %s482_s22 = sshll.u32 %s156_s9, 4  ;;  %s497_s27 = sshll.u32 %s737_s15, 8 }
  0x30   : > { %s872_s6 = scalar_lea.hbm %s962_s0, %s497_s27  ;;  %s160_s7 = scalar_lea.vmem [#allocation2], %s482_s22 }
  0x31   : > { %s167_s8 = sshll.u32 %s160_s7, 4  ;;  %s876_s29 = scalar_lea.sflag [#allocation3], %s156_s9  ;;  %s874_s8 = int_to_ptr.vmem [resolvable:$true] %s167_s8 }
  0x32   : > { %s641_s10 = scalar_lea.hbm %s872_s6, 256  ;;  %p643_p11 = pneg %p842_p3 }
  0x33   : > { %p642_p6 = scmp.ne.s32.totalorder %s872_s6, %s641_s10  ;;  %s646_s20 = scalar_lea.hbm %s962_s0, 3072 }
  0x34   : > { %p647_p10 = scmp.lt.s32.totalorder %s872_s6, %s962_s0  ;;  %p648_p1 = scmp.lt.s32.totalorder %s646_s20, %s641_s10 }
  0x35   : > { %p644_p0 = pnand %p643_p11, %p642_p6 }
  0x36   : > { %p649_p5 = por %p648_p1, %p647_p10 }
  0x37   : > { %p645_p7 = pneg %p644_p0 }
  0x39   : > { %p650_p2 = pnand %p649_p5, %p645_p7 }
  0x3b   : > { %653 = shalt.err (!%p650_p2)
}
  0x3c   : > { %s654_s9 = scalar_lea.vmem %s874_s8, 256  ;;  %s743_s22 = smov [#allocation2]  }
  0x3d   : > { %p655_p8 = scmp.ne.s32.totalorder %s874_s8, %s654_s9  ;;  %s659_s4 = sshll.u32 %s743_s22, 4  ;;  %s660_s4 = int_to_ptr.vmem [resolvable:$false] %s659_s4 }
  0x3e   : > { %s661_s7 = scalar_lea.vmem %s660_s4, 512  ;;  %p662_p12 = scmp.lt.s32.totalorder %s874_s8, %s660_s4 }
  0x3f   : > { %p657_p9 = pnand %p655_p8, %p643_p11  ;;  %p663_p6 = scmp.lt.s32.totalorder %s661_s7, %s654_s9 }
  0x41   : > { %p658_p4 = pneg %p657_p9  ;;  %p664_p0 = por %p663_p6, %p662_p12 }
  0x43   : > { %p665_p13 = pnand %p664_p0, %p658_p4 }
  0x45   : > { %668 = shalt.err (!%p665_p13)
}
  0x46   : > { %540 = dma.hbm_to_vmem [thread:$0]  (!%p842_p3), %s872_s6, 256, %s874_s8, %s876_s29, %s741_s11, %s741_s11, %s742_s17  }
  0x47   : > { %p977_p11 = scmp.ne.s32.totalorder %s974_s26, 0 }
  0x48   : > { %s903_s10 = sand.u32 (!%p977_p11), 1, %s729_s13   ;;  %p978_p13 = scmp.ne.s32.totalorder (!%p977_p11), %s971_s23, 0 }
  0x49   : > { %179 = sbr.rel (%p977_p11) target bundleno = 488 (0x1e8), region = 32  ;;  %s486_s5 = sshll.u32 (!%p977_p11), %s903_s10, 4 }
  0x4a   : > { %s182_s19 = scalar_lea.sflag (!%p977_p11), [#allocation3], %s903_s10  ;;  %s185_s20 = scalar_lea.vmem (!%p977_p11), [#allocation2], %s486_s5 }
  0x4e   : > { %712 = dma.done.wait (%p978_p13), %s182_s19, 256  }
  0x4f   : > { %714 = vsyncadd (%p978_p13), %s182_s19, 4294967040  ;;  %p979_p7 = scmp.eq.s32.totalorder %s788_s16, 0 }
  0x51   : > { %716 = dma.done.wait (%p979_p7), [#allocation6], 384   ;;  %p980_p3 = pmov %p979_p7 }
  0x52   : > { %v744_v0 = vmov 0.0   ;;  %vm745_vm0 = vmmov 0   ;;  %vm299_vm1 = vcmask 1043456   ;;  %v218_v1 = vld [vmem:[%s185_s20 + $0x8] sm:$0xff]  ;;  %v217_v2 = vld [vmem:[%s185_s20] sm:$0xff]  ;;  %vm219_vm2 = vcmask 130048  }
  0x53   : > { %718 = vsyncadd (%p980_p3), [#allocation6], 4294966912  ;;  %504 = vmatprep.subr.mxu0 %v744_v0  ;;  %508 = vmatprep.mubr.msk.f32.mxu0 %vm745_vm0, %v744_v0  ;;  %v216_v3 = vld [vmem:[#allocation5] sm:$0xff]  ;;  %v294_v4 = vld [vmem:[#allocation7 + $0x8] sm:$0xf]  ;;  %vm295_vm3 = vcmask 97280  }
  0x54   : > { %511 = vmatprep.subr.mxu1 %v744_v0  ;;  %515 = vmatprep.mubr.msk.f32.mxu1 %vm745_vm0, %v744_v0  ;;  %v293_v5 = vld [vmem:[#allocation7] sm:$0xff]  ;;  %s489_s23 = sshll.u32 %s903_s10, 3  ;;  %s494_s11 = sshll.u32 %s788_s16, 7 }
  0x55   : > { %505 = vmatpush3.msra.mxu0 %v218_v1  ;;  %512 = vmatpush3.msk.msra.mxu1 %vm299_vm1, %v294_v4  ;;  %s215_s26 = scalar_lea.vmem [#allocation8], %s489_s23  ;;  %s922_s8 = scalar_lea.hbm %s965_s3, %s494_s11 }
  0x56   : > { %506 = vmatprep.subr.mxu0 %v744_v0  ;;  %513 = vmatprep.subr.mxu1 %v744_v0  ;;  %s388_s30 = sshll.u32 %s215_s26, 4  ;;  %s375_s29 = scalar_lea.sflag [#allocation4], %s903_s10  ;;  %s917_s30 = int_to_ptr.vmem [resolvable:$true] %s388_s30 }
  0x57   : > { %507 = vmatpush3.msra.mxu0 %v217_v2  ;;  %514 = vmatpush3.msra.mxu1 %v293_v5  ;;  %s669_s27 = scalar_lea.vmem %s917_s30, 128  ;;  %p981_p1 = scmp.ne.s32.totalorder %s972_s24, 0 }
  0x58   : > { %509 = vmatmul.mubr.msk.f32.vlgmr.msra.gmra.mxu0 %vm219_vm2, %v216_v3  ;;  %p670_p10 = scmp.ne.s32.totalorder %s917_s30, %s669_s27  ;;  %s746_s16 = smov [#allocation8]  }
  0x59   : > { %s673_s28 = sshll.u32 %s746_s16, 4  ;;  %s674_s28 = int_to_ptr.vmem [resolvable:$false] %s673_s28 }
  0x5a   : > { %p671_p5 = pnand %p670_p10, %p981_p1  ;;  %s675_s9 = scalar_lea.vmem %s674_s28, 256 }
  0x5b   : > { %p676_p8 = scmp.lt.s32.totalorder %s917_s30, %s674_s28  ;;  %p677_p9 = scmp.lt.s32.totalorder %s675_s9, %s669_s27 }
  0x5c   : > { %p672_p2 = pneg %p671_p5 }
  0x5d   : > { %p678_p4 = por %p677_p9, %p676_p8 }
  0x5f   : > { %p679_p12 = pnand %p678_p4, %p672_p2 }
 0x118   : > { %v289_v6 = vpop.f32.mrf.mxu0 }
 0x119   : > { %516 = vmatmul.mubr.msk.f32.vlgmr.msra.gmra.mxu1 %vm295_vm3, %v289_v6 }
 0x11a   : > { %v510_v7 = vpop.f32.mrf.mxu0 }
 0x1d9   : > { %v369_v8 = vpop.f32.mrf.mxu1 }
 0x1da   : > { %373 = vst [vmem:[%s215_s26] sm:$0xff] %v369_v8 }
 0x1db   : > { %v517_v9 = vpop.f32.mrf.mxu1 }
 0x1dc   : > { %682 = shalt.err (!%p679_p12)
}
 0x1dd   : > { %s683_s22 = scalar_lea.hbm %s922_s8, 128  ;;  %s687_s10 = scalar_lea.hbm %s965_s3, 1536 }
 0x1de   : > { %p684_p6 = scmp.ne.s32.totalorder %s922_s8, %s683_s22  ;;  %p688_p13 = scmp.lt.s32.totalorder %s922_s8, %s965_s3 }
 0x1df   : > { %p689_p7 = scmp.lt.s32.totalorder %s687_s10, %s683_s22 }
 0x1e0   : > { %p685_p0 = pnand %p684_p6, %p981_p1 }
 0x1e1   : > { %p690_p3 = por %p689_p7, %p688_p13 }
 0x1e2   : > { %p686_p11 = pneg %p685_p0 }
 0x1e4   : > { %p691_p10 = pnand %p690_p3, %p686_p11 }
 0x1e6   : > { %694 = shalt.err (!%p691_p10)
}
 0x1e7   : > { %528 = dma.vmem_to_hbm [thread:$0]  (%p981_p1), %s917_s30, 128, %s922_s8, %s375_s29  }
 0x1e8 PF: > { %p550_p5 = scmp.ge.s32.totalorder %s737_s15, 2  ;;  %s400_s20 = sand.u32 1, %s725_s12  }
 0x1e9   : > { %p982_p2 = scmp.ne.s32.totalorder %s973_s25, 0  ;;  %s401_s23 = scalar_lea.sflag [#allocation4], %s400_s20 }
 0x1eb   : > { %p542_p8 = pnand %p550_p5, %p982_p2 }
 0x1ed   : > { %p543_p9 = pneg %p542_p8 }
 0x1ef   : > { %720 = dma.done.wait (%p543_p9), %s401_s23, 128  }
 0x1f0   : > { %722 = vsyncadd (%p543_p9), %s401_s23, 4294967168  ;;  %p17_p4 = scmp.ge.s32.totalorder %s792_s18, 14   ;;  %s983_s12 = smov %s729_s13 }
 0x1f1   : > { %s984_s13 = smov %s733_s14  ;;  %s985_s14 = smov %s804_s21 }
 0x1f2   : > { %s986_s15 = smov %s792_s18  ;;  %19 = sbr.rel (!%p17_p4) target bundleno = 6 (0x6), region = 85 }
 0x1f7   :  { %406 = vsyncpa [#allocation3], 1 }
 0x1f8   :  { %408 = vsyncpa [#allocation3 + $0x1], 1 }
 0x1f9   :  { %409 = vsyncpa [#allocation6], 1 }
 0x1fa   :  { %410 = vsyncpa [#allocation4], 1 }
 0x1fb   :  { %412 = vsyncpa [#allocation4 + $0x1], 1 }

</bundles_post_ra>
